<compile_context>
chip_gen: v5e
topology: v5e:2x2
jax: 0.10.0
libtpu: 0.0.40
codegen_flags: <defaults>
</compile_context>

<pallas_src>
import jax
import jax.numpy as jnp
from jax.experimental import pallas as pl
from jax.experimental.pallas import tpu as pltpu


def calculate_laplacian_with_self_loop(matrix):
    """Pure-JAX port of the reference helper (glue, runs once)."""
    matrix = matrix + jnp.eye(matrix.shape[0], dtype=matrix.dtype)
    row_sum = matrix.sum(1)
    d_inv_sqrt = jnp.power(row_sum, -0.5).reshape(-1)
    d_inv_sqrt = jnp.where(jnp.isinf(d_inv_sqrt), 0.0, d_inv_sqrt)
    d_mat_inv_sqrt = jnp.diag(d_inv_sqrt)
    normalized_laplacian = (matrix @ d_mat_inv_sqrt).T @ d_mat_inv_sqrt
    return normalized_laplacian


def _tgcn_gconv_kernel(lap_ref, x_ref, h_ref, wd_ref, wh_ref, b_ref, out_ref):
    # lap_ref: (N, N)        normalized laplacian
    # x_ref:   (B*N, D)      node features, batch-flattened
    # h_ref:   (B*N, H)      hidden state, batch-flattened
    # wd_ref:  (D, O_pad)    weight rows multiplying node features (lane-padded)
    # wh_ref:  (H, O_pad)    weight rows multiplying hidden state  (lane-padded)
    # b_ref:   (1, O_pad)    bias (lane-padded)
    # out_ref: (B, N, O_pad)
    n = lap_ref.shape[0]
    batch = out_ref.shape[0]

    lap = lap_ref[...]
    bias = b_ref[...]

    # (1) One fused weight matmul over the whole batch:
    #     C @ W == X @ W_d + Hd @ W_h   -> (B*N, O_pad), lane-dense.
    cw = jnp.dot(x_ref[...], wd_ref[...], preferred_element_type=jnp.float32)
    cw = cw + jnp.dot(h_ref[...], wh_ref[...], preferred_element_type=jnp.float32)

    # (2) Apply the laplacian to the small (N, O_pad) per-batch slab:
    #     out[b] = L @ (C[b] @ W) + bias.  Static unroll over the tiny batch;
    #     row slices are sublane-aligned (N multiple of 8).
    for b in range(batch):
        cw_b = cw[b * n:(b + 1) * n, :]                               # (N, O_pad)
        out_b = jnp.dot(lap, cw_b, preferred_element_type=jnp.float32) + bias
        out_ref[b] = out_b.astype(out_ref.dtype)


def tgcn_graph_convolution(laplacian, weights, biases, inputs, hidden_state):
    """Forward pass.

    laplacian: (N, N) float32
    weights:   (F, O) float32, F = node_dim + hidden_dim (node rows first)
    biases:    (O,)   float32
    inputs:    (B, N, D) float32
    hidden_state: (B, N*H) float32
    returns:   (B, N*O) float32
    """
    B, N, D = inputs.shape
    F, O = weights.shape
    H = F - D

    # Lane-pad the output dim to a multiple of 128 so all in-kernel stores are
    # unmasked / lane-dense.  Zero padding keeps the math exact; sliced after.
    O_pad = pl.cdiv(O, 128) * 128
    pad = O_pad - O

    # Split W by concat order (node features first, then hidden): no XLA concat.
    w_d = weights[:D]
    w_h = weights[D:]
    bias_v = biases
    if pad:
        w_d = jnp.pad(w_d, ((0, 0), (0, pad)))
        w_h = jnp.pad(w_h, ((0, 0), (0, pad)))
        bias_v = jnp.pad(bias_v, (0, pad))
    bias_2d = bias_v.reshape(1, O_pad)

    # Free, contiguous reshapes (no data movement in XLA).
    x2 = inputs.reshape(B * N, D)
    h2 = hidden_state.reshape(B * N, H)

    flops = 2 * B * N * (F * O_pad + N * O_pad)
    bytes_accessed = 4 * (N * N + B * N * D + B * N * H
                          + F * O_pad + O_pad + B * N * O_pad)

    out = pl.pallas_call(
        _tgcn_gconv_kernel,
        out_shape=jax.ShapeDtypeStruct((B, N, O_pad), jnp.float32),
        grid_spec=pltpu.PrefetchScalarGridSpec(
            num_scalar_prefetch=0,
            grid=(1,),  # whole batch in one step: no per-batch pipeline overhead
            in_specs=[
                pl.BlockSpec((N, N), lambda i: (0, 0)),           # laplacian
                pl.BlockSpec((B * N, D), lambda i: (0, 0)),       # inputs
                pl.BlockSpec((B * N, H), lambda i: (0, 0)),       # hidden
                pl.BlockSpec((D, O_pad), lambda i: (0, 0)),       # W_d
                pl.BlockSpec((H, O_pad), lambda i: (0, 0)),       # W_h
                pl.BlockSpec((1, O_pad), lambda i: (0, 0)),       # bias
            ],
            out_specs=pl.BlockSpec((B, N, O_pad), lambda i: (0, 0, 0)),
        ),
        compiler_params=pltpu.CompilerParams(
            dimension_semantics=("arbitrary",)),
        cost_estimate=pl.CostEstimate(
            flops=flops, transcendentals=0, bytes_accessed=bytes_accessed),
    )(laplacian, x2, h2, w_d, w_h, bias_2d)

    if pad:
        out = out[:, :, :O]
    return out.reshape(B, N * O)


def _xavier_uniform(key, shape, dtype=jnp.float32):
    fan_in, fan_out = shape
    limit = jnp.sqrt(6.0 / (fan_in + fan_out))
    return jax.random.uniform(key, shape, dtype, minval=-limit, maxval=limit)


def _reference_forward(laplacian, weights, biases, inputs, hidden_state):
    """Pure-JAX re-implementation mirroring the PyTorch reshapes exactly."""
    B, N, D = inputs.shape
    F, O = weights.shape
    H = F - D
    hidden = hidden_state.reshape((B, N, H))
    concat = jnp.concatenate((inputs, hidden), axis=2)             # (B, N, F)
    concat = jnp.transpose(concat, (1, 2, 0)).reshape((N, F * B))  # (N, F*B)
    a_times = laplacian @ concat                                   # (N, F*B)
    a_times = a_times.reshape((N, F, B))
    a_times = jnp.transpose(a_times, (2, 0, 1)).reshape((B * N, F))
    out = a_times @ weights + biases
    return out.reshape((B, N * O))


if __name__ == "__main__":
    # Small shapes implied by the forward pass.
    B = 2          # batch_size
    N = 16         # num_nodes
    D = 4          # node_dim (dim_node)
    H = 32         # hidden_state_dim (_input_dim)
    O = 8          # output_dim
    bias_init = 0.0

    key = jax.random.PRNGKey(0)
    k_adj, k_w, k_x, k_h = jax.random.split(key, 4)

    # Deterministic synthetic adjacency (symmetric, non-negative).
    adj_raw = jax.random.uniform(k_adj, (N, N), jnp.float32)
    adj = (adj_raw + adj_raw.T) * 0.5
    laplacian = calculate_laplacian_with_self_loop(adj)

    # Parameters (xavier uniform weights, constant biases) — deterministic.
    weights = _xavier_uniform(k_w, (D + H, O))
    biases = jnp.full((O,), bias_init, dtype=jnp.float32)

    # Inputs.
    inputs = jax.random.normal(k_x, (B, N, D), jnp.float32)
    hidden_state = jax.random.normal(k_h, (B, N * H), jnp.float32)

    out = tgcn_graph_convolution(laplacian, weights, biases, inputs, hidden_state)
    out = jax.block_until_ready(out)

    ref = _reference_forward(laplacian, weights, biases, inputs, hidden_state)
    assert out.shape == (B, N * O)
    assert jnp.allclose(out, ref, atol=1e-4, rtol=1e-4)

    print("KERNEL_OK")
</pallas_src>

<mosaic_0001>
module attributes {stable_mosaic.version = 11 : i64} {
  func.func @_tgcn_gconv_kernel(%arg0: i32, %arg1: memref<16x16xf32, #tpu.memory_space<vmem>>, %arg2: memref<32x4xf32, #tpu.memory_space<vmem>>, %arg3: memref<32x32xf32, #tpu.memory_space<vmem>>, %arg4: memref<4x128xf32, #tpu.memory_space<vmem>>, %arg5: memref<32x128xf32, #tpu.memory_space<vmem>>, %arg6: memref<1x128xf32, #tpu.memory_space<vmem>>, %arg7: memref<2x16x128xf32, #tpu.memory_space<vmem>>) attributes {dimension_semantics = [#tpu.dimension_semantics<arbitrary>], iteration_bounds = array<i64: 1>, scalar_prefetch = 0 : i64, scratch_operands = 0 : i64, tpu.core_type = #tpu.core_type<tc>, window_params = [{pipeline_mode = #tpu.pipeline_mode<synchronous>, transform_indices = @transform_0, window_bounds = array<i64: 16, 16>}, {pipeline_mode = #tpu.pipeline_mode<synchronous>, transform_indices = @transform_1, window_bounds = array<i64: 32, 4>}, {pipeline_mode = #tpu.pipeline_mode<synchronous>, transform_indices = @transform_2, window_bounds = array<i64: 32, 32>}, {pipeline_mode = #tpu.pipeline_mode<synchronous>, transform_indices = @transform_3, window_bounds = array<i64: 4, 128>}, {pipeline_mode = #tpu.pipeline_mode<synchronous>, transform_indices = @transform_4, window_bounds = array<i64: 32, 128>}, {pipeline_mode = #tpu.pipeline_mode<synchronous>, transform_indices = @transform_5, window_bounds = array<i64: 1, 128>}, {pipeline_mode = #tpu.pipeline_mode<synchronous>, transform_indices = @transform_6, window_bounds = array<i64: 2, 16, 128>}]} {
    %c0 = arith.constant 0 : index
    %c0_0 = arith.constant 0 : index
    %0 = vector.load %arg1[%c0, %c0_0] : memref<16x16xf32, #tpu.memory_space<vmem>>, vector<16x16xf32>
    %c0_1 = arith.constant 0 : index
    %c0_2 = arith.constant 0 : index
    %1 = vector.load %arg6[%c0_1, %c0_2] : memref<1x128xf32, #tpu.memory_space<vmem>>, vector<1x128xf32>
    %c0_3 = arith.constant 0 : index
    %c0_4 = arith.constant 0 : index
    %2 = vector.load %arg2[%c0_3, %c0_4] : memref<32x4xf32, #tpu.memory_space<vmem>>, vector<32x4xf32>
    %c0_5 = arith.constant 0 : index
    %c0_6 = arith.constant 0 : index
    %3 = vector.load %arg4[%c0_5, %c0_6] : memref<4x128xf32, #tpu.memory_space<vmem>>, vector<4x128xf32>
    %cst = arith.constant dense<0.000000e+00> : vector<32x128xf32>
    %4 = tpu.matmul %2, %3, %cst {dimension_numbers = #tpu.dot_dimension_numbers<[1], [0], [0], [1], [0, 0, 1, 1], [], []>} : vector<32x4xf32>, vector<4x128xf32>, vector<32x128xf32> -> vector<32x128xf32>
    %c0_7 = arith.constant 0 : index
    %c0_8 = arith.constant 0 : index
    %5 = vector.load %arg3[%c0_7, %c0_8] : memref<32x32xf32, #tpu.memory_space<vmem>>, vector<32x32xf32>
    %c0_9 = arith.constant 0 : index
    %c0_10 = arith.constant 0 : index
    %6 = vector.load %arg5[%c0_9, %c0_10] : memref<32x128xf32, #tpu.memory_space<vmem>>, vector<32x128xf32>
    %cst_11 = arith.constant dense<0.000000e+00> : vector<32x128xf32>
    %7 = tpu.matmul %5, %6, %cst_11 {dimension_numbers = #tpu.dot_dimension_numbers<[1], [0], [0], [1], [0, 0, 1, 1], [], []>} : vector<32x32xf32>, vector<32x128xf32>, vector<32x128xf32> -> vector<32x128xf32>
    %8 = arith.addf %4, %7 : vector<32x128xf32>
    %9 = vector.extract_strided_slice %8 {offsets = [0, 0], sizes = [16, 128], strides = [1, 1]} : vector<32x128xf32> to vector<16x128xf32>
    %cst_12 = arith.constant dense<0.000000e+00> : vector<16x128xf32>
    %10 = tpu.matmul %0, %9, %cst_12 {dimension_numbers = #tpu.dot_dimension_numbers<[1], [0], [0], [1], [0, 0, 1, 1], [], []>} : vector<16x16xf32>, vector<16x128xf32>, vector<16x128xf32> -> vector<16x128xf32>
    %11 = vector.broadcast %1 : vector<1x128xf32> to vector<16x128xf32>
    %12 = arith.addf %10, %11 : vector<16x128xf32>
    %c0_13 = arith.constant 0 : index
    %c0_14 = arith.constant 0 : index
    %c0_15 = arith.constant 0 : index
    %13 = vector.load %arg7[%c0_13, %c0_14, %c0_15] : memref<2x16x128xf32, #tpu.memory_space<vmem>>, vector<1x16x128xf32>
    %14 = vector.shape_cast %13 : vector<1x16x128xf32> to vector<16x128xf32>
    %15 = vector.shape_cast %12 : vector<16x128xf32> to vector<1x16x128xf32>
    tpu.vector_store %arg7[%c0_13, %c0_14, %c0_15], %15 {strides = array<i32>} : memref<2x16x128xf32, #tpu.memory_space<vmem>>, vector<1x16x128xf32>,
    %16 = vector.extract_strided_slice %8 {offsets = [16, 0], sizes = [16, 128], strides = [1, 1]} : vector<32x128xf32> to vector<16x128xf32>
    %cst_16 = arith.constant dense<0.000000e+00> : vector<16x128xf32>
    %17 = tpu.matmul %0, %16, %cst_16 {dimension_numbers = #tpu.dot_dimension_numbers<[1], [0], [0], [1], [0, 0, 1, 1], [], []>} : vector<16x16xf32>, vector<16x128xf32>, vector<16x128xf32> -> vector<16x128xf32>
    %18 = vector.broadcast %1 : vector<1x128xf32> to vector<16x128xf32>
    %19 = arith.addf %17, %18 : vector<16x128xf32>
    %c1 = arith.constant 1 : index
    %c0_17 = arith.constant 0 : index
    %c0_18 = arith.constant 0 : index
    %20 = vector.load %arg7[%c1, %c0_17, %c0_18] : memref<2x16x128xf32, #tpu.memory_space<vmem>>, vector<1x16x128xf32>
    %21 = vector.shape_cast %20 : vector<1x16x128xf32> to vector<16x128xf32>
    %22 = vector.shape_cast %19 : vector<16x128xf32> to vector<1x16x128xf32>
    tpu.vector_store %arg7[%c1, %c0_17, %c0_18], %22 {strides = array<i32>} : memref<2x16x128xf32, #tpu.memory_space<vmem>>, vector<1x16x128xf32>,
    return
  }
  func.func @transform_0(%arg0: i32) -> (i32, i32) {
    %c0_i32 = arith.constant 0 : i32
    %c0_i32_0 = arith.constant 0 : i32
    %c0_i32_1 = arith.constant 0 : i32
    return %c0_i32, %c0_i32_0 : i32, i32
  }
  func.func @transform_1(%arg0: i32) -> (i32, i32) {
    %c0_i32 = arith.constant 0 : i32
    %c0_i32_0 = arith.constant 0 : i32
    %c0_i32_1 = arith.constant 0 : i32
    return %c0_i32, %c0_i32_0 : i32, i32
  }
  func.func @transform_2(%arg0: i32) -> (i32, i32) {
    %c0_i32 = arith.constant 0 : i32
    %c0_i32_0 = arith.constant 0 : i32
    %c0_i32_1 = arith.constant 0 : i32
    return %c0_i32, %c0_i32_0 : i32, i32
  }
  func.func @transform_3(%arg0: i32) -> (i32, i32) {
    %c0_i32 = arith.constant 0 : i32
    %c0_i32_0 = arith.constant 0 : i32
    %c0_i32_1 = arith.constant 0 : i32
    return %c0_i32, %c0_i32_0 : i32, i32
  }
  func.func @transform_4(%arg0: i32) -> (i32, i32) {
    %c0_i32 = arith.constant 0 : i32
    %c0_i32_0 = arith.constant 0 : i32
    %c0_i32_1 = arith.constant 0 : i32
    return %c0_i32, %c0_i32_0 : i32, i32
  }
  func.func @transform_5(%arg0: i32) -> (i32, i32) {
    %c0_i32 = arith.constant 0 : i32
    %c0_i32_0 = arith.constant 0 : i32
    %c0_i32_1 = arith.constant 0 : i32
    return %c0_i32, %c0_i32_0 : i32, i32
  }
  func.func @transform_6(%arg0: i32) -> (i32, i32, i32) {
    %c0_i32 = arith.constant 0 : i32
    %c0_i32_0 = arith.constant 0 : i32
    %c0_i32_1 = arith.constant 0 : i32
    %c0_i32_2 = arith.constant 0 : i32
    return %c0_i32, %c0_i32_0, %c0_i32_1 : i32, i32, i32
  }
}

</mosaic_0001>

<bundles_post_ra>
// kernel: tpu_custom_call.1
= control target key start
LH: loop header
LB: loop body
LE: loop exit
PB: predicated region body
PF: predicated region fallthrough
CT: control target
= control target key end

     0   :  { %11 = vsyncpa [#allocation3], 0  ;;  %s434_s0 = inlined_call_operand.hbm [shape: f32[16,16], index: 0, kind: input, shape index: {}]   ;;  %s435_s1 = inlined_call_operand.vmem [shape: f32[32,4], index: 1, kind: input, shape index: {}]   ;;  %s436_s2 = inlined_call_operand.vmem [shape: f32[32,32], index: 2, kind: input, shape index: {}]   ;;  %s437_s3 = inlined_call_operand.vmem [shape: f32[4,128], index: 3, kind: input, shape index: {}]   ;;  %s438_s4 = inlined_call_operand.hbm [shape: f32[32,128], index: 4, kind: input, shape index: {}]   ;;  %s439_s5 = inlined_call_operand.vmem [shape: f32[1,128], index: 5, kind: input, shape index: {}]   ;;  %s440_s6 = inlined_call_operand.hbm [shape: f32[2,16,128], index: 6, kind: output, shape index: {}]  }
   0x1   :  { %12 = vsyncpa [#allocation6], 0 }
   0x2   :  { %13 = vsyncpa [#allocation4], 0  ;;  %s18_s23 = sshll.u32 %s434_s0, 4  ;;  %s342_s24 = smov [#allocation2]   ;;  %s19_s23 = int_to_ptr.hbm [resolvable:$true] %s18_s23 }
   0x3   :  { %s20_s25 = sshll.u32 %s342_s24, 4  ;;  %s37_s28 = sshll.u32 %s438_s4, 4  ;;  %s21_s25 = int_to_ptr.vmem [resolvable:$true] %s20_s25  ;;  %s38_s28 = int_to_ptr.hbm [resolvable:$true] %s37_s28 }
   0x4   :  { %s343_s29 = smov 128   ;;  %s344_s30 = smov 8  }
   0x5   :  { %26 = dma.hbm_to_vmem [thread:$0]  %s19_s23, 256, %s21_s25, [#allocation3], %s343_s29, %s343_s29, %s344_s30  }
   0x6   :  { %s345_s7 = smov [#allocation5]  }
   0x7   :  { %s39_s8 = sshll.u32 %s345_s7, 4  ;;  %s40_s8 = int_to_ptr.vmem [resolvable:$true] %s39_s8 }
   0x8   :  { %45 = dma.hbm_to_vmem [thread:$0]  %s38_s28, 512, %s40_s8, [#allocation6], %s343_s29, %s343_s29, %s344_s30  }
   0x9   :  { %336 = dma.done.wait [#allocation3], 256  }
   0xa   :  { %337 = vsyncadd [#allocation3], 4294967040 }
   0xb   :  { %338 = dma.done.wait [#allocation6], 512  }
   0xc   :  { %339 = vsyncadd [#allocation6], 4294966784  ;;  %vm127_vm0 = vcmask 1043456   ;;  %vm114_vm1 = vcmask 31744   ;;  %v71_v0 = vld [vmem:[#allocation5 + $0x18] sm:$0xff]  ;;  %v59_v2 = vld [vmem:[%s435_s1] sm:$0xff] }
   0xd   :  { %v63_v1 = vld [vmem:[%s437_s3] sm:$0xf]  ;;  %97 = vmatpush.msra.mxu0 %v71_v0  ;;  %v69_v4 = vld [vmem:[#allocation5 + $0x8] sm:$0xff]  ;;  %254 = vmatpush.msra.mxu2 %v71_v0  ;;  %v68_v5 = vld [vmem:[#allocation5] sm:$0xff]  ;;  %vm72_vm2 = vcmask 261120   ;;  %vm163_vm3 = vcmask 130048  }
   0xe   :  { %245 = vmatpush.msk.msra.mxu1 %vm127_vm0, %v63_v1  ;;  %v70_v3 = vld [vmem:[#allocation5 + $0x10] sm:$0xff]  ;;  %v67_v7 = vld [vmem:[%s436_s2 + $0x18] sm:$0xff]  ;;  %v60_v8 = vld [vmem:[%s435_s1 + $0x8] sm:$0xff]  ;;  %s346_s24 = smov [#allocation7]   ;;  %s227_s28 = sshll.u32 %s440_s6, 4  ;;  %s228_s28 = int_to_ptr.hbm [resolvable:$true] %s227_s28 }
   0xf   :  { %246 = vmatmul.msk.f32.vlgmr.msra.gmra.mxu1 %vm114_vm1, %v59_v2  ;;  %98 = vmatpush.msra.mxu0 %v70_v3  ;;  %v64_v6 = vld [vmem:[%s436_s2] sm:$0xff]  ;;  %v65_v9 = vld [vmem:[%s436_s2 + $0x8] sm:$0xff]  ;;  %v61_v10 = vld [vmem:[%s435_s1 + $0x10] sm:$0xff]  ;;  %s225_s25 = sshll.u32 %s346_s24, 4  ;;  %s226_s25 = int_to_ptr.vmem [resolvable:$true] %s225_s25 }
  0x10   :  { %255 = vmatpush.msra.mxu2 %v70_v3  ;;  %v66_v11 = vld [vmem:[%s436_s2 + $0x10] sm:$0xff]  ;;  %v62_v12 = vld [vmem:[%s435_s1 + $0x18] sm:$0xff]  ;;  %v56_v20 = vld [vmem:[#allocation2] sm:$0xff] }
  0x11   :  { %99 = vmatpush.msra.mxu0 %v69_v4  ;;  %v57_v25 = vld [vmem:[#allocation2 + $0x8] sm:$0xff]  ;;  %v263_v27 = vld [vmem:[%s439_s5] ss:$0 sm:$0xff] }
  0x12   :  { %256 = vmatpush.msra.mxu2 %v69_v4 }
  0x13   :  { %100 = vmatpush.msra.mxu0 %v68_v5 }
  0x14   :  { %241 = vmatmul.msk.f32.vlgmr.msra.gmra.mxu0 %vm72_vm2, %v64_v6  ;;  %257 = vmatpush.msra.mxu2 %v68_v5 }
  0x15   :  { %244 = vmatmul.msk.f32.vlgmr.msra.gmra.mxu2 %vm72_vm2, %v67_v7 }
  0x17   :  { %247 = vmatmul.msk.f32.gmra.mxu1 %vm114_vm1, %v60_v8 }
  0x1c   :  { %242 = vmatmul.msk.f32.gmra.mxu0 %vm72_vm2, %v65_v9 }
  0x1f   :  { %248 = vmatmul.msk.f32.gmra.mxu1 %vm114_vm1, %v61_v10 }
  0x24   :  { %243 = vmatmul.msk.f32.gmra.mxu0 %vm72_vm2, %v66_v11 }
  0x27   :  { %249 = vmatmul.msk.f32.gmra.mxu1 %vm114_vm1, %v62_v12 }
  0x8c   :  { %v148_v13 = vpop.f32.mrf.mxu1 }
  0x91   :  { %v102_v14 = vpop.f32.mrf.mxu0 }
  0x92   :  { %v149_v19 = vadd.f32 %v148_v13, %v102_v14 }
  0x94   :  { %v151_v15 = vpop.f32.mrf.mxu1 }
  0x98   :  { %v111_v21 = vpop.f32.mrf.mxu2 }
  0x99   :  { %v105_v16 = vpop.f32.mrf.mxu0 }
  0x9a   :  { %v152_v17 = vadd.f32 %v151_v15, %v105_v16 }
  0x9c   :  { %v154_v18 = vpop.f32.mrf.mxu1  ;;  %184 = vmatpush.msrb.mxu2 %v152_v17 }
  0x9e   :  { %185 = vmatpush.msrb.mxu2 %v149_v19 }
  0x9f   :  { %250 = vmatmul.msk.f32.vlgmr.msrb.gmra.mxu2 %vm163_vm3, %v56_v20 }
  0xa1   :  { %v108_v22 = vpop.f32.mrf.mxu0 }
  0xa2   :  { %v155_v26 = vadd.f32 %v154_v18, %v108_v22 }
  0xa4   :  { %v157_v23 = vpop.f32.mrf.mxu1 }
  0xa5   :  { %v158_v24 = vadd.f32 %v157_v23, %v111_v21 }
  0xa7   :  { %209 = vmatpush.msra.mxu3 %v158_v24  ;;  %251 = vmatmul.msk.f32.gmra.mxu2 %vm163_vm3, %v57_v25 }
  0xa9   :  { %210 = vmatpush.msra.mxu3 %v155_v26 }
  0xaa   :  { %252 = vmatmul.msk.f32.vlgmr.msra.gmra.mxu3 %vm163_vm3, %v56_v20 }
  0xb2   :  { %253 = vmatmul.msk.f32.gmra.mxu3 %vm163_vm3, %v57_v25 }
 0x122   :  { %v187_v28 = vpop.f32.mrf.mxu2 }
 0x123   :  { %v188_v29 = vadd.f32 %v263_v27, %v187_v28 }
 0x125   :  { %193 = vst [vmem:[#allocation7] sm:$0xff] %v188_v29 }
 0x12a   :  { %v190_v30 = vpop.f32.mrf.mxu2 }
 0x12b   :  { %v191_v31 = vadd.f32 %v263_v27, %v190_v30 }
 0x12d   :  { %v212_v32 = vpop.f32.mrf.mxu3  ;;  %194 = vst [vmem:[#allocation7 + $0x8] sm:$0xff] %v191_v31 }
 0x12e   :  { %v213_v33 = vadd.f32 %v263_v27, %v212_v32 }
 0x130   :  { %219 = vst [vmem:[#allocation7 + $0x10] sm:$0xff] %v213_v33 }
 0x135   :  { %v215_v34 = vpop.f32.mrf.mxu3 }
 0x136   :  { %v216_v35 = vadd.f32 %v263_v27, %v215_v34 }
 0x138   :  { %220 = vst [vmem:[#allocation7 + $0x18] sm:$0xff] %v216_v35 }
 0x139   :  { %233 = dma.vmem_to_hbm [thread:$0]  %s226_s25, 512, %s228_s28, [#allocation4], %s343_s29, %s343_s29, %s344_s30  }
 0x13a   :  { %340 = dma.done.wait [#allocation4], 512  }
 0x13b   :  { %341 = vsyncadd [#allocation4], 4294966784 }
 0x13c   :  { %238 = vsyncpa [#allocation3], 1 }
 0x13d   :  { %239 = vsyncpa [#allocation6], 1 }
 0x13e   :  { %240 = vsyncpa [#allocation4], 1 }

</bundles_post_ra>
